<compile_context>
chip_gen: v7x
topology: tpu7x:2x2x1
jax: 0.10.0
libtpu: 0.0.40
codegen_flags: <defaults>
</compile_context>

<pallas_src>
import math

import jax
import jax.numpy as jnp
import numpy as np
from jax import lax
from jax.experimental import pallas as pl
from jax.experimental.pallas import tpu as pltpu

_INV_SQRT2 = 1.0 / math.sqrt(2.0)


def _round_up(x, m):
    return (x + m - 1) // m * m


def _gelu_exact(x):
    # PyTorch nn.GELU() default: 0.5 * x * (1 + erf(x / sqrt(2)))
    return 0.5 * x * (1.0 + lax.erf(x * _INV_SQRT2))


def _bytes(shape, dtype):
    return int(np.prod(shape)) * jnp.dtype(dtype).itemsize


def _vmem_capacity_bytes():
    # Query physical VMEM if possible; fall back to the smallest generation
    # (v7x: 64 MiB per TensorCore) so the limit is always safe.
    try:
        return int(pltpu.get_tpu_info().vmem_capacity_bytes)
    except Exception:
        return 64 * 1024 * 1024


def timestep_embedder_kernel(t_ref,      # VMEM (tb, 1)   int32
                             table_ref,  # VMEM (Tp, Hp)  bf16  (grid-constant)
                             w1_ref,     # VMEM (Hp, tk)  bf16  k-slice
                             b1_ref,     # VMEM (1, tk)   f32   k-slice
                             w2_ref,     # VMEM (tk, Hp)  bf16  k-slice
                             b2_ref,     # VMEM (1, Hp)   f32   (grid-constant)
                             out_ref,    # VMEM (tb, Hp)  f32   (resident over k)
                             x_ref):     # scratch VMEM (tb, Hp) bf16
    k = pl.program_id(1)
    nk = pl.num_programs(1)

    @pl.when(k == 0)
    def _():
        # Embedding gather as a one-hot matmul on the MXU (lane-dense: Tp % 128 == 0).
        tb, tt = t_ref.shape[0], table_ref.shape[0]
        cols = lax.broadcasted_iota(jnp.int32, (tb, tt), 1)
        onehot = (t_ref[...] == cols).astype(table_ref.dtype)            # (tb, Tp)
        x = jnp.dot(onehot, table_ref[...], preferred_element_type=jnp.float32)
        x_ref[...] = x.astype(x_ref.dtype)
        out_ref[...] = jnp.zeros_like(out_ref)

    # Per-k-tile: Linear1 slice + GELU + Linear2 slice, accumulated in f32
    # directly into the resident output block.
    h = jnp.dot(x_ref[...], w1_ref[...], preferred_element_type=jnp.float32)
    h = _gelu_exact(h + b1_ref[...])
    out_ref[...] += jnp.dot(h.astype(w2_ref.dtype), w2_ref[...],
                            preferred_element_type=jnp.float32)

    @pl.when(k == nk - 1)
    def _():
        out_ref[...] += b2_ref[...]


def prepare_timestep_embedder_params(table, w1, b1, w2, b2):
    """One-time parameter preparation (padding + bf16 cast), hoisted out of forward."""
    T, H = table.shape
    H4 = w1.shape[1]

    Hp = _round_up(H, 128)
    H4p = _round_up(H4, 128)
    Tp = _round_up(T, 128)   # lane-dense one-hot contraction dim

    f32, bf16 = jnp.float32, jnp.bfloat16
    return {
        "table": jnp.zeros((Tp, Hp), bf16).at[:T, :H].set(table.astype(bf16)),
        "w1": jnp.zeros((Hp, H4p), bf16).at[:H, :H4].set(w1.astype(bf16)),
        "b1": jnp.zeros((1, H4p), f32).at[0, :H4].set(b1.astype(f32)),
        "w2": jnp.zeros((H4p, Hp), bf16).at[:H4, :H].set(w2.astype(bf16)),
        "b2": jnp.zeros((1, Hp), f32).at[0, :H].set(b2.astype(f32)),
        "T": T, "H": H, "H4": H4,
    }


def timestep_embedder(t, params, *, tk_max=1024, tb_max=256):
    """t: (B,) int timestep indices; params: output of prepare_timestep_embedder_params.

    Note: any t >= num_timesteps yields a zero embedding row (one-hot misses) —
    matches "no OOB read" rather than PyTorch's index error.
    """
    B = t.shape[0]
    Tp, Hp = params["table"].shape
    H4p = params["w1"].shape[1]
    H = params["H"]

    # --- batch tiling ---------------------------------------------------------
    if B <= tb_max:
        tb = _round_up(B, 8)
        Bp = tb
    else:
        tb = tb_max
        Bp = _round_up(B, tb)
    # TODO(synk): for v7x dual-TensorCore with a single batch tile, an extra
    # output-Hp "parallel" grid axis would split weight streaming across cores.

    t_p = jnp.zeros((Bp, 1), jnp.int32).at[:B, 0].set(t.astype(jnp.int32))

    # --- k tiling: largest 128-multiple divisor of H4p that fits the VMEM budget
    capacity = _vmem_capacity_bytes()
    budget = int(0.75 * capacity)

    f32, bf16 = jnp.float32, jnp.bfloat16

    def footprint(tk):
        # Conservative: assume everything double-buffered (covers the fallback
        # path where the constants are not single-buffered), plus scratch and
        # headroom for in-kernel intermediates (one-hot, gelu activations).
        blocks = 2 * (_bytes((tb, 1), jnp.int32)
                      + _bytes((Tp, Hp), bf16)
                      + _bytes((Hp, tk), bf16) + _bytes((1, tk), f32)
                      + _bytes((tk, Hp), bf16) + _bytes((1, Hp), f32)
                      + _bytes((tb, Hp), f32))
        scratch = _bytes((tb, Hp), bf16)
        headroom = _bytes((tb, Tp), bf16) + 2 * _bytes((tb, tk), f32) + (2 << 20)
        return blocks + scratch + headroom

    cand_max = (min(tk_max, H4p) // 128) * 128
    tk = 128
    for cand in range(cand_max, 127, -128):
        if H4p % cand == 0 and footprint(cand) <= budget:
            tk = cand
            break

    vmem_limit = int(min(budget, max(footprint(tk), 16 * 1024 * 1024)))
    grid = (Bp // tb, H4p // tk)

    # --- pallas call ----------------------------------------------------------
    def make_call(single_buffer_constants):
        const_kwargs = {}
        if single_buffer_constants and hasattr(pl, "Buffered"):
            # Grid-constant blocks: nothing to pipeline, single-buffer them.
            const_kwargs = dict(pipeline_mode=pl.Buffered(1))

        in_specs = [
            pl.BlockSpec((tb, 1), lambda b, k: (b, 0)),                      # t
            pl.BlockSpec((Tp, Hp), lambda b, k: (0, 0), **const_kwargs),     # table
            pl.BlockSpec((Hp, tk), lambda b, k: (0, k)),                     # w1 k-slice
            pl.BlockSpec((1, tk), lambda b, k: (0, k)),                      # b1 k-slice
            pl.BlockSpec((tk, Hp), lambda b, k: (k, 0)),                     # w2 k-slice
            pl.BlockSpec((1, Hp), lambda b, k: (0, 0), **const_kwargs),      # b2
        ]
        grid_spec = pltpu.PrefetchScalarGridSpec(
            num_scalar_prefetch=0,
            grid=grid,
            in_specs=in_specs,
            out_specs=pl.BlockSpec((tb, Hp), lambda b, k: (b, 0)),
            scratch_shapes=[pltpu.VMEM((tb, Hp), bf16)],
        )
        return pl.pallas_call(
            timestep_embedder_kernel,
            out_shape=jax.ShapeDtypeStruct((Bp, Hp), f32),
            grid_spec=grid_spec,
            compiler_params=pltpu.CompilerParams(
                dimension_semantics=("parallel", "arbitrary"),
                vmem_limit_bytes=vmem_limit),
        )(t_p, params["table"], params["w1"], params["b1"],
          params["w2"], params["b2"])

    try:
        out = make_call(True)
    except Exception:
        # pipeline_mode=pl.Buffered(1) not supported on this jax version —
        # fall back to default double-buffering (correctness unaffected).
        out = make_call(False)

    return out[:B, :H]


def reference(t, table, w1, b1, w2, b2):
    # Mirrors the kernel numerics: bf16 operands, f32 accumulation, exact GELU.
    table_bf = table.astype(jnp.bfloat16)
    w1_bf = w1.astype(jnp.bfloat16)
    w2_bf = w2.astype(jnp.bfloat16)
    x = jnp.take(table_bf, t, axis=0)
    h = jnp.dot(x, w1_bf, preferred_element_type=jnp.float32) + b1
    h = _gelu_exact(h)
    return jnp.dot(h.astype(jnp.bfloat16), w2_bf,
                   preferred_element_type=jnp.float32) + b2


if __name__ == "__main__":
    # Small, deterministic configuration (discrete-timestep path of the module).
    hidden_size = 32
    num_timesteps = 64
    batch = 8

    key = jax.random.PRNGKey(0)
    k_emb, k_w1, k_b1, k_w2, k_b2, k_t = jax.random.split(key, 6)

    # Parameters follow nn.Embedding / nn.Linear shapes from the module.
    table = jax.random.normal(k_emb, (num_timesteps, hidden_size), jnp.float32) * 0.02
    w1 = jax.random.normal(k_w1, (hidden_size, 4 * hidden_size), jnp.float32) * 0.02
    b1 = jax.random.normal(k_b1, (4 * hidden_size,), jnp.float32) * 0.02
    w2 = jax.random.normal(k_w2, (4 * hidden_size, hidden_size), jnp.float32) * 0.02
    b2 = jax.random.normal(k_b2, (hidden_size,), jnp.float32) * 0.02

    # Timestep indices (the forward input `t`).
    t = jax.random.randint(k_t, (batch,), 0, num_timesteps, dtype=jnp.int32)

    # One-time parameter preparation (padding / bf16 cast hoisted out of forward).
    params = jax.tree_util.tree_map(
        lambda x: jax.block_until_ready(x) if isinstance(x, jax.Array) else x,
        prepare_timestep_embedder_params(table, w1, b1, w2, b2))

    # TODO(synk): t_continous=True branch (nn.Linear(1, hidden_size) on float t)
    # is not implemented; this kernel covers the default discrete-embedding path.
    # TODO(synk): for very large num_timesteps (>= ~512), a scalar-prefetch row
    # gather would avoid DMAing the full table per batch tile.

    out = jax.block_until_ready(timestep_embedder(t, params))
    ref = jax.block_until_ready(reference(t, table, w1, b1, w2, b2))

    np.testing.assert_allclose(np.asarray(out), np.asarray(ref), rtol=2e-2, atol=2e-4)
    assert out.shape == (batch, hidden_size) and out.dtype == jnp.float32

    print("KERNEL_OK")
</pallas_src>

<mosaic_0001>
module attributes {stable_mosaic.version = 11 : i64} {
  func.func @timestep_embedder_kernel(%arg0: i32, %arg1: i32, %arg2: memref<8x1xi32, #tpu.memory_space<vmem>>, %arg3: memref<128x128xbf16, #tpu.memory_space<vmem>>, %arg4: memref<128x128xbf16, #tpu.memory_space<vmem>>, %arg5: memref<1x128xf32, #tpu.memory_space<vmem>>, %arg6: memref<128x128xbf16, #tpu.memory_space<vmem>>, %arg7: memref<1x128xf32, #tpu.memory_space<vmem>>, %arg8: memref<8x128xf32, #tpu.memory_space<vmem>>, %arg9: memref<8x128xbf16, #tpu.memory_space<vmem>>) attributes {dimension_semantics = [#tpu.dimension_semantics<parallel>, #tpu.dimension_semantics<arbitrary>], iteration_bounds = array<i64: 1, 1>, scalar_prefetch = 0 : i64, scratch_operands = 1 : i64, tpu.core_type = #tpu.core_type<tc>, window_params = [{transform_indices = @transform_0, window_bounds = array<i64: 8, 1>}, {pipeline_mode = #tpu.pipeline_mode<synchronous>, transform_indices = @transform_1, window_bounds = array<i64: 128, 128>}, {transform_indices = @transform_2, window_bounds = array<i64: 128, 128>}, {transform_indices = @transform_3, window_bounds = array<i64: 1, 128>}, {transform_indices = @transform_4, window_bounds = array<i64: 128, 128>}, {pipeline_mode = #tpu.pipeline_mode<synchronous>, transform_indices = @transform_5, window_bounds = array<i64: 1, 128>}, {transform_indices = @transform_6, window_bounds = array<i64: 8, 128>}]} {
    %c0_i32 = arith.constant 0 : i32
    %0 = arith.cmpi eq, %arg1, %c0_i32 : i32
    %1 = arith.extui %0 : i1 to i32
    %c0_i32_0 = arith.constant 0 : i32
    %2 = arith.cmpi ne, %1, %c0_i32_0 : i32
    scf.if %2 {
      %26 = tpu.iota {dimensions = array<i32: 1>} : vector<8x128xi32>
      %c0_18 = arith.constant 0 : index
      %c0_19 = arith.constant 0 : index
      %27 = vector.load %arg2[%c0_18, %c0_19] : memref<8x1xi32, #tpu.memory_space<vmem>>, vector<8x1xi32>
      %28 = vector.broadcast %27 : vector<8x1xi32> to vector<8x128xi32>
      %29 = arith.cmpi eq, %28, %26 : vector<8x128xi32>
      %30 = arith.extui %29 : vector<8x128xi1> to vector<8x128xi32>
      %31 = arith.sitofp %30 : vector<8x128xi32> to vector<8x128xf32>
      %32 = arith.truncf %31 : vector<8x128xf32> to vector<8x128xbf16>
      %c0_20 = arith.constant 0 : index
      %c0_21 = arith.constant 0 : index
      %33 = vector.load %arg3[%c0_20, %c0_21] : memref<128x128xbf16, #tpu.memory_space<vmem>>, vector<128x128xbf16>
      %cst_22 = arith.constant dense<0.000000e+00> : vector<8x128xf32>
      %34 = tpu.matmul %32, %33, %cst_22 {dimension_numbers = #tpu.dot_dimension_numbers<[1], [0], [0], [1], [0, 0, 1, 1], [], []>} : vector<8x128xbf16>, vector<128x128xbf16>, vector<8x128xf32> -> vector<8x128xf32>
      %35 = arith.truncf %34 : vector<8x128xf32> to vector<8x128xbf16>
      %c0_23 = arith.constant 0 : index
      %c0_24 = arith.constant 0 : index
      %36 = vector.load %arg9[%c0_23, %c0_24] : memref<8x128xbf16, #tpu.memory_space<vmem>>, vector<8x128xbf16>
      tpu.vector_store %arg9[%c0_23, %c0_24], %35 {strides = array<i32>} : memref<8x128xbf16, #tpu.memory_space<vmem>>, vector<8x128xbf16>,
      %cst_25 = arith.constant 0.000000e+00 : f32
      %37 = vector.broadcast %cst_25 : f32 to vector<8x128xf32>
      %c0_26 = arith.constant 0 : index
      %c0_27 = arith.constant 0 : index
      %38 = vector.load %arg8[%c0_26, %c0_27] : memref<8x128xf32, #tpu.memory_space<vmem>>, vector<8x128xf32>
      tpu.vector_store %arg8[%c0_26, %c0_27], %37 {strides = array<i32>} : memref<8x128xf32, #tpu.memory_space<vmem>>, vector<8x128xf32>,
    } else {
    }
    %c0 = arith.constant 0 : index
    %c0_1 = arith.constant 0 : index
    %3 = vector.load %arg9[%c0, %c0_1] : memref<8x128xbf16, #tpu.memory_space<vmem>>, vector<8x128xbf16>
    %c0_2 = arith.constant 0 : index
    %c0_3 = arith.constant 0 : index
    %4 = vector.load %arg4[%c0_2, %c0_3] : memref<128x128xbf16, #tpu.memory_space<vmem>>, vector<128x128xbf16>
    %cst = arith.constant dense<0.000000e+00> : vector<8x128xf32>
    %5 = tpu.matmul %3, %4, %cst {dimension_numbers = #tpu.dot_dimension_numbers<[1], [0], [0], [1], [0, 0, 1, 1], [], []>} : vector<8x128xbf16>, vector<128x128xbf16>, vector<8x128xf32> -> vector<8x128xf32>
    %c0_4 = arith.constant 0 : index
    %c0_5 = arith.constant 0 : index
    %6 = vector.load %arg5[%c0_4, %c0_5] : memref<1x128xf32, #tpu.memory_space<vmem>>, vector<1x128xf32>
    %7 = vector.broadcast %6 : vector<1x128xf32> to vector<8x128xf32>
    %8 = arith.addf %5, %7 : vector<8x128xf32>
    %cst_6 = arith.constant 5.000000e-01 : f32
    %9 = vector.broadcast %cst_6 : f32 to vector<8x128xf32>
    %10 = arith.mulf %9, %8 : vector<8x128xf32>
    %cst_7 = arith.constant 0.707106769 : f32
    %11 = vector.broadcast %cst_7 : f32 to vector<8x128xf32>
    %12 = arith.mulf %8, %11 : vector<8x128xf32>
    %13 = math.erf %12 : vector<8x128xf32>
    %cst_8 = arith.constant 1.000000e+00 : f32
    %14 = vector.broadcast %cst_8 : f32 to vector<8x128xf32>
    %15 = arith.addf %14, %13 : vector<8x128xf32>
    %16 = arith.mulf %10, %15 : vector<8x128xf32>
    %c0_9 = arith.constant 0 : index
    %c0_10 = arith.constant 0 : index
    %17 = vector.load %arg8[%c0_9, %c0_10] : memref<8x128xf32, #tpu.memory_space<vmem>>, vector<8x128xf32>
    %18 = arith.truncf %16 : vector<8x128xf32> to vector<8x128xbf16>
    %c0_11 = arith.constant 0 : index
    %c0_12 = arith.constant 0 : index
    %19 = vector.load %arg6[%c0_11, %c0_12] : memref<128x128xbf16, #tpu.memory_space<vmem>>, vector<128x128xbf16>
    %cst_13 = arith.constant dense<0.000000e+00> : vector<8x128xf32>
    %20 = tpu.matmul %18, %19, %cst_13 {dimension_numbers = #tpu.dot_dimension_numbers<[1], [0], [0], [1], [0, 0, 1, 1], [], []>} : vector<8x128xbf16>, vector<128x128xbf16>, vector<8x128xf32> -> vector<8x128xf32>
    %21 = arith.addf %17, %20 : vector<8x128xf32>
    %c0_14 = arith.constant 0 : index
    %c0_15 = arith.constant 0 : index
    %22 = vector.load %arg8[%c0_14, %c0_15] : memref<8x128xf32, #tpu.memory_space<vmem>>, vector<8x128xf32>
    tpu.vector_store %arg8[%c0_14, %c0_15], %21 {strides = array<i32>} : memref<8x128xf32, #tpu.memory_space<vmem>>, vector<8x128xf32>,
    %c0_i32_16 = arith.constant 0 : i32
    %23 = arith.cmpi eq, %arg1, %c0_i32_16 : i32
    %24 = arith.extui %23 : i1 to i32
    %c0_i32_17 = arith.constant 0 : i32
    %25 = arith.cmpi ne, %24, %c0_i32_17 : i32
    scf.if %25 {
      %c0_18 = arith.constant 0 : index
      %c0_19 = arith.constant 0 : index
      %26 = vector.load %arg8[%c0_18, %c0_19] : memref<8x128xf32, #tpu.memory_space<vmem>>, vector<8x128xf32>
      %c0_20 = arith.constant 0 : index
      %c0_21 = arith.constant 0 : index
      %27 = vector.load %arg7[%c0_20, %c0_21] : memref<1x128xf32, #tpu.memory_space<vmem>>, vector<1x128xf32>
      %28 = vector.broadcast %27 : vector<1x128xf32> to vector<8x128xf32>
      %29 = arith.addf %26, %28 : vector<8x128xf32>
      %c0_22 = arith.constant 0 : index
      %c0_23 = arith.constant 0 : index
      %30 = vector.load %arg8[%c0_22, %c0_23] : memref<8x128xf32, #tpu.memory_space<vmem>>, vector<8x128xf32>
      tpu.vector_store %arg8[%c0_22, %c0_23], %29 {strides = array<i32>} : memref<8x128xf32, #tpu.memory_space<vmem>>, vector<8x128xf32>,
    } else {
    }
    return
  }
  func.func @transform_0(%arg0: i32, %arg1: i32) -> (i32, i32) {
    %c0_i32 = arith.constant 0 : i32
    %c0_i32_0 = arith.constant 0 : i32
    return %arg0, %c0_i32 : i32, i32
  }
  func.func @transform_1(%arg0: i32, %arg1: i32) -> (i32, i32) {
    %c0_i32 = arith.constant 0 : i32
    %c0_i32_0 = arith.constant 0 : i32
    %c0_i32_1 = arith.constant 0 : i32
    return %c0_i32, %c0_i32_0 : i32, i32
  }
  func.func @transform_2(%arg0: i32, %arg1: i32) -> (i32, i32) {
    %c0_i32 = arith.constant 0 : i32
    %c0_i32_0 = arith.constant 0 : i32
    return %c0_i32, %arg1 : i32, i32
  }
  func.func @transform_3(%arg0: i32, %arg1: i32) -> (i32, i32) {
    %c0_i32 = arith.constant 0 : i32
    %c0_i32_0 = arith.constant 0 : i32
    return %c0_i32, %arg1 : i32, i32
  }
  func.func @transform_4(%arg0: i32, %arg1: i32) -> (i32, i32) {
    %c0_i32 = arith.constant 0 : i32
    %c0_i32_0 = arith.constant 0 : i32
    return %arg1, %c0_i32 : i32, i32
  }
  func.func @transform_5(%arg0: i32, %arg1: i32) -> (i32, i32) {
    %c0_i32 = arith.constant 0 : i32
    %c0_i32_0 = arith.constant 0 : i32
    %c0_i32_1 = arith.constant 0 : i32
    return %c0_i32, %c0_i32_0 : i32, i32
  }
  func.func @transform_6(%arg0: i32, %arg1: i32) -> (i32, i32) {
    %c0_i32 = arith.constant 0 : i32
    %c0_i32_0 = arith.constant 0 : i32
    return %arg0, %c0_i32 : i32, i32
  }
}

module attributes {stable_mosaic.version = 11 : i64} {
  func.func @timestep_embedder_kernel(%arg0: i32, %arg1: i32, %arg2: memref<8x1xi32, #tpu.memory_space<vmem>>, %arg3: memref<128x128xbf16, #tpu.memory_space<vmem>>, %arg4: memref<128x128xbf16, #tpu.memory_space<vmem>>, %arg5: memref<1x128xf32, #tpu.memory_space<vmem>>, %arg6: memref<128x128xbf16, #tpu.memory_space<vmem>>, %arg7: memref<1x128xf32, #tpu.memory_space<vmem>>, %arg8: memref<8x128xf32, #tpu.memory_space<vmem>>, %arg9: memref<8x128xbf16, #tpu.memory_space<vmem>>) attributes {dimension_semantics = [#tpu.dimension_semantics<parallel>, #tpu.dimension_semantics<arbitrary>], iteration_bounds = array<i64: 1, 1>, scalar_prefetch = 0 : i64, scratch_operands = 1 : i64, tpu.core_type = #tpu.core_type<tc>, window_params = [{transform_indices = @transform_0, window_bounds = array<i64: 8, 1>}, {pipeline_mode = #tpu.pipeline_mode<synchronous>, transform_indices = @transform_1, window_bounds = array<i64: 128, 128>}, {transform_indices = @transform_2, window_bounds = array<i64: 128, 128>}, {transform_indices = @transform_3, window_bounds = array<i64: 1, 128>}, {transform_indices = @transform_4, window_bounds = array<i64: 128, 128>}, {pipeline_mode = #tpu.pipeline_mode<synchronous>, transform_indices = @transform_5, window_bounds = array<i64: 1, 128>}, {transform_indices = @transform_6, window_bounds = array<i64: 8, 128>}]} {
    %c0_i32 = arith.constant 0 : i32
    %0 = arith.cmpi eq, %arg1, %c0_i32 : i32
    %1 = arith.extui %0 : i1 to i32
    %c0_i32_0 = arith.constant 0 : i32
    %2 = arith.cmpi ne, %1, %c0_i32_0 : i32
    scf.if %2 {
      %26 = tpu.iota {dimensions = array<i32: 1>} : vector<8x128xi32>
      %c0_18 = arith.constant 0 : index
      %c0_19 = arith.constant 0 : index
      %27 = vector.load %arg2[%c0_18, %c0_19] : memref<8x1xi32, #tpu.memory_space<vmem>>, vector<8x1xi32>
      %28 = vector.broadcast %27 : vector<8x1xi32> to vector<8x128xi32>
      %29 = arith.cmpi eq, %28, %26 : vector<8x128xi32>
      %30 = arith.extui %29 : vector<8x128xi1> to vector<8x128xi32>
      %31 = arith.sitofp %30 : vector<8x128xi32> to vector<8x128xf32>
      %32 = arith.truncf %31 : vector<8x128xf32> to vector<8x128xbf16>
      %c0_20 = arith.constant 0 : index
      %c0_21 = arith.constant 0 : index
      %33 = vector.load %arg3[%c0_20, %c0_21] : memref<128x128xbf16, #tpu.memory_space<vmem>>, vector<128x128xbf16>
      %cst_22 = arith.constant dense<0.000000e+00> : vector<8x128xf32>
      %34 = tpu.matmul %32, %33, %cst_22 {dimension_numbers = #tpu.dot_dimension_numbers<[1], [0], [0], [1], [0, 0, 1, 1], [], []>} : vector<8x128xbf16>, vector<128x128xbf16>, vector<8x128xf32> -> vector<8x128xf32>
      %35 = arith.truncf %34 : vector<8x128xf32> to vector<8x128xbf16>
      %c0_23 = arith.constant 0 : index
      %c0_24 = arith.constant 0 : index
      %36 = vector.load %arg9[%c0_23, %c0_24] : memref<8x128xbf16, #tpu.memory_space<vmem>>, vector<8x128xbf16>
      tpu.vector_store %arg9[%c0_23, %c0_24], %35 {strides = array<i32>} : memref<8x128xbf16, #tpu.memory_space<vmem>>, vector<8x128xbf16>,
      %cst_25 = arith.constant 0.000000e+00 : f32
      %37 = vector.broadcast %cst_25 : f32 to vector<8x128xf32>
      %c0_26 = arith.constant 0 : index
      %c0_27 = arith.constant 0 : index
      %38 = vector.load %arg8[%c0_26, %c0_27] : memref<8x128xf32, #tpu.memory_space<vmem>>, vector<8x128xf32>
      tpu.vector_store %arg8[%c0_26, %c0_27], %37 {strides = array<i32>} : memref<8x128xf32, #tpu.memory_space<vmem>>, vector<8x128xf32>,
    } else {
    }
    %c0 = arith.constant 0 : index
    %c0_1 = arith.constant 0 : index
    %3 = vector.load %arg9[%c0, %c0_1] : memref<8x128xbf16, #tpu.memory_space<vmem>>, vector<8x128xbf16>
    %c0_2 = arith.constant 0 : index
    %c0_3 = arith.constant 0 : index
    %4 = vector.load %arg4[%c0_2, %c0_3] : memref<128x128xbf16, #tpu.memory_space<vmem>>, vector<128x128xbf16>
    %cst = arith.constant dense<0.000000e+00> : vector<8x128xf32>
    %5 = tpu.matmul %3, %4, %cst {dimension_numbers = #tpu.dot_dimension_numbers<[1], [0], [0], [1], [0, 0, 1, 1], [], []>} : vector<8x128xbf16>, vector<128x128xbf16>, vector<8x128xf32> -> vector<8x128xf32>
    %c0_4 = arith.constant 0 : index
    %c0_5 = arith.constant 0 : index
    %6 = vector.load %arg5[%c0_4, %c0_5] : memref<1x128xf32, #tpu.memory_space<vmem>>, vector<1x128xf32>
    %7 = vector.broadcast %6 : vector<1x128xf32> to vector<8x128xf32>
    %8 = arith.addf %5, %7 : vector<8x128xf32>
    %cst_6 = arith.constant 5.000000e-01 : f32
    %9 = vector.broadcast %cst_6 : f32 to vector<8x128xf32>
    %10 = arith.mulf %9, %8 : vector<8x128xf32>
    %cst_7 = arith.constant 0.707106769 : f32
    %11 = vector.broadcast %cst_7 : f32 to vector<8x128xf32>
    %12 = arith.mulf %8, %11 : vector<8x128xf32>
    %13 = math.erf %12 : vector<8x128xf32>
    %cst_8 = arith.constant 1.000000e+00 : f32
    %14 = vector.broadcast %cst_8 : f32 to vector<8x128xf32>
    %15 = arith.addf %14, %13 : vector<8x128xf32>
    %16 = arith.mulf %10, %15 : vector<8x128xf32>
    %c0_9 = arith.constant 0 : index
    %c0_10 = arith.constant 0 : index
    %17 = vector.load %arg8[%c0_9, %c0_10] : memref<8x128xf32, #tpu.memory_space<vmem>>, vector<8x128xf32>
    %18 = arith.truncf %16 : vector<8x128xf32> to vector<8x128xbf16>
    %c0_11 = arith.constant 0 : index
    %c0_12 = arith.constant 0 : index
    %19 = vector.load %arg6[%c0_11, %c0_12] : memref<128x128xbf16, #tpu.memory_space<vmem>>, vector<128x128xbf16>
    %cst_13 = arith.constant dense<0.000000e+00> : vector<8x128xf32>
    %20 = tpu.matmul %18, %19, %cst_13 {dimension_numbers = #tpu.dot_dimension_numbers<[1], [0], [0], [1], [0, 0, 1, 1], [], []>} : vector<8x128xbf16>, vector<128x128xbf16>, vector<8x128xf32> -> vector<8x128xf32>
    %21 = arith.addf %17, %20 : vector<8x128xf32>
    %c0_14 = arith.constant 0 : index
    %c0_15 = arith.constant 0 : index
    %22 = vector.load %arg8[%c0_14, %c0_15] : memref<8x128xf32, #tpu.memory_space<vmem>>, vector<8x128xf32>
    tpu.vector_store %arg8[%c0_14, %c0_15], %21 {strides = array<i32>} : memref<8x128xf32, #tpu.memory_space<vmem>>, vector<8x128xf32>,
    %c0_i32_16 = arith.constant 0 : i32
    %23 = arith.cmpi eq, %arg1, %c0_i32_16 : i32
    %24 = arith.extui %23 : i1 to i32
    %c0_i32_17 = arith.constant 0 : i32
    %25 = arith.cmpi ne, %24, %c0_i32_17 : i32
    scf.if %25 {
      %c0_18 = arith.constant 0 : index
      %c0_19 = arith.constant 0 : index
      %26 = vector.load %arg8[%c0_18, %c0_19] : memref<8x128xf32, #tpu.memory_space<vmem>>, vector<8x128xf32>
      %c0_20 = arith.constant 0 : index
      %c0_21 = arith.constant 0 : index
      %27 = vector.load %arg7[%c0_20, %c0_21] : memref<1x128xf32, #tpu.memory_space<vmem>>, vector<1x128xf32>
      %28 = vector.broadcast %27 : vector<1x128xf32> to vector<8x128xf32>
      %29 = arith.addf %26, %28 : vector<8x128xf32>
      %c0_22 = arith.constant 0 : index
      %c0_23 = arith.constant 0 : index
      %30 = vector.load %arg8[%c0_22, %c0_23] : memref<8x128xf32, #tpu.memory_space<vmem>>, vector<8x128xf32>
      tpu.vector_store %arg8[%c0_22, %c0_23], %29 {strides = array<i32>} : memref<8x128xf32, #tpu.memory_space<vmem>>, vector<8x128xf32>,
    } else {
    }
    return
  }
  func.func @transform_0(%arg0: i32, %arg1: i32) -> (i32, i32) {
    %c0_i32 = arith.constant 0 : i32
    %c0_i32_0 = arith.constant 0 : i32
    return %arg0, %c0_i32 : i32, i32
  }
  func.func @transform_1(%arg0: i32, %arg1: i32) -> (i32, i32) {
    %c0_i32 = arith.constant 0 : i32
    %c0_i32_0 = arith.constant 0 : i32
    %c0_i32_1 = arith.constant 0 : i32
    return %c0_i32, %c0_i32_0 : i32, i32
  }
  func.func @transform_2(%arg0: i32, %arg1: i32) -> (i32, i32) {
    %c0_i32 = arith.constant 0 : i32
    %c0_i32_0 = arith.constant 0 : i32
    return %c0_i32, %arg1 : i32, i32
  }
  func.func @transform_3(%arg0: i32, %arg1: i32) -> (i32, i32) {
    %c0_i32 = arith.constant 0 : i32
    %c0_i32_0 = arith.constant 0 : i32
    return %c0_i32, %arg1 : i32, i32
  }
  func.func @transform_4(%arg0: i32, %arg1: i32) -> (i32, i32) {
    %c0_i32 = arith.constant 0 : i32
    %c0_i32_0 = arith.constant 0 : i32
    return %arg1, %c0_i32 : i32, i32
  }
  func.func @transform_5(%arg0: i32, %arg1: i32) -> (i32, i32) {
    %c0_i32 = arith.constant 0 : i32
    %c0_i32_0 = arith.constant 0 : i32
    %c0_i32_1 = arith.constant 0 : i32
    return %c0_i32, %c0_i32_0 : i32, i32
  }
  func.func @transform_6(%arg0: i32, %arg1: i32) -> (i32, i32) {
    %c0_i32 = arith.constant 0 : i32
    %c0_i32_0 = arith.constant 0 : i32
    return %arg0, %c0_i32 : i32, i32
  }
}

</mosaic_0001>

<bundles_post_ra>
// kernel: tpu_custom_call.1
= control target key start
LH: loop header
LB: loop body
LE: loop exit
PB: predicated region body
PF: predicated region fallthrough
CT: control target
= control target key end

     0   :  { %11 = vsyncpa [#allocation4], 0  ;;  %s836_s0 = inlined_call_operand.vmem [shape: s32[8,1], index: 0, kind: input, shape index: {}]   ;;  %s837_s1 = inlined_call_operand.hbm [shape: bf16[128,128], index: 1, kind: input, shape index: {}]   ;;  %s838_s2 = inlined_call_operand.hbm [shape: bf16[128,128], index: 2, kind: input, shape index: {}]   ;;  %s839_s3 = inlined_call_operand.vmem [shape: f32[1,128], index: 3, kind: input, shape index: {}]   ;;  %s840_s4 = inlined_call_operand.hbm [shape: bf16[128,128], index: 4, kind: input, shape index: {}]   ;;  %s841_s5 = inlined_call_operand.vmem [shape: f32[1,128], index: 5, kind: input, shape index: {}]   ;;  %s842_s6 = inlined_call_operand.hbm [shape: f32[8,128], index: 6, kind: output, shape index: {}]  }
   0x1   :  { %12 = vsyncpa [#allocation7], 0 }
   0x2   :  { %13 = vsyncpa [#allocation5], 0  ;;  %s688_s21 = smov [#allocation6]   ;;  %s689_s23 = smov [#allocation3]  }
   0x3   :  { %s33_s22 = sshll.u32 %s688_s21, 4  ;;  %s21_s24 = sshll.u32 %s689_s23, 4  ;;  %s34_s22 = int_to_ptr.vmem [resolvable:$true] %s33_s22  ;;  %s733_s24 = int_to_ptr.vmem [resolvable:$true] %s21_s24 }
   0x4   :  { %s594_s27 = scalar_lea.hbm %s838_s2, 1024 }
   0x5   :  { %p595_p0 = scmp.ne.s32.totalorder %s838_s2, %s594_s27  ;;  %p598_p1 = scmp.lt.u32.totalorder %s594_s27, %s838_s2 }
   0x7   :  { %p600_p2 = pnand %p598_p1, %p595_p0 }
   0x9   :  { %603 = shalt.err (!%p600_p2)
}
   0xa   :  { %s604_s8 = scalar_lea.vmem %s34_s22, 1024  ;;  %p609_p4 = scmp.lt.s32.totalorder %s34_s22, %s34_s22 }
   0xb   :  { %p605_p3 = scmp.ne.s32.totalorder %s34_s22, %s604_s8  ;;  %p610_p5 = scmp.lt.s32.totalorder %s604_s8, %s604_s8 }
   0xd   :  { %p611_p6 = por %p610_p5, %p609_p4 }
   0xf   :  { %p612_p7 = pnand %p611_p6, %p605_p3 }
  0x11   :  { %615 = shalt.err (!%p612_p7)
}
  0x12   :  { %s690_s9 = smov 64   ;;  %s691_s10 = smov 4  }
  0x13   :  { %39 = dma.hbm_to_vmem [thread:$0]  %s838_s2, 1024, %s34_s22, [#allocation7], %s690_s9, %s690_s9, %s691_s10  }
  0x14   :  { %s616_s15 = scalar_lea.hbm %s837_s1, 1024 }
  0x15   :  { %p617_p8 = scmp.ne.s32.totalorder %s837_s1, %s616_s15  ;;  %p620_p9 = scmp.lt.u32.totalorder %s616_s15, %s837_s1 }
  0x17   :  { %p622_p10 = pnand %p620_p9, %p617_p8 }
  0x19   :  { %625 = shalt.err (!%p622_p10)
}
  0x1a   :  { %s626_s20 = scalar_lea.vmem %s733_s24, 1024  ;;  %p631_p12 = scmp.lt.s32.totalorder %s733_s24, %s733_s24 }
  0x1b   :  { %p627_p11 = scmp.ne.s32.totalorder %s733_s24, %s626_s20  ;;  %p632_p13 = scmp.lt.s32.totalorder %s626_s20, %s626_s20 }
  0x1d   :  { %p633_p0 = por %p632_p13, %p631_p12 }
  0x1f   :  { %p634_p1 = pnand %p633_p0, %p627_p11 }
  0x21   :  { %637 = shalt.err (!%p634_p1)
}
  0x22   :  { %27 = dma.hbm_to_vmem [thread:$0]  %s837_s1, 1024, %s733_s24, [#allocation4], %s690_s9, %s690_s9, %s691_s10  }
  0x23   :  { %s692_s22 = smov [#allocation8]   ;;  %s638_s27 = scalar_lea.hbm %s840_s4, 1024 }
  0x24   :  { %s47_s23 = sshll.u32 %s692_s22, 4  ;;  %p639_p2 = scmp.ne.s32.totalorder %s840_s4, %s638_s27  ;;  %s48_s23 = int_to_ptr.vmem [resolvable:$true] %s47_s23 }
  0x25   :  { %p642_p3 = scmp.lt.u32.totalorder %s638_s27, %s840_s4 }
  0x27   :  { %p644_p4 = pnand %p642_p3, %p639_p2 }
  0x29   :  { %647 = shalt.err (!%p644_p4)
}
  0x2a   :  { %s648_s8 = scalar_lea.vmem %s48_s23, 1024  ;;  %p653_p6 = scmp.lt.s32.totalorder %s48_s23, %s48_s23 }
  0x2b   :  { %p649_p5 = scmp.ne.s32.totalorder %s48_s23, %s648_s8  ;;  %p654_p7 = scmp.lt.s32.totalorder %s648_s8, %s648_s8 }
  0x2d   :  { %p655_p8 = por %p654_p7, %p653_p6 }
  0x2f   :  { %p656_p9 = pnand %p655_p8, %p649_p5 }
  0x31   :  { %659 = shalt.err (!%p656_p9)
}
  0x32   :  { %53 = dma.hbm_to_vmem [thread:$0]  %s840_s4, 1024, %s48_s23, [#allocation7], %s690_s9, %s690_s9, %s691_s10  }
  0x33   :  { %682 = dma.done.wait [#allocation4], 1024  }
  0x34   :  { %683 = vsyncadd [#allocation4], 4294966272 }
  0x35   :  { %684 = dma.done.wait [#allocation7], 2048  }
  0x36   :  { %685 = vsyncadd [#allocation7], 4294965248  ;;  %v693_v0 = vmov 0   ;;  %v694_v1 = vmov 0.0   ;;  %v72_v2 = vld [vmem:[%s836_s0] sm:$0xff]  ;;  %vm695_vm0 = vmmov 0   ;;  %v70_v16 = vlaneseq }
  0x37   :  { %567 = vset.pattern.permute.xlu0 %v693_v0  ;;  %497 = vmatprep.subr.bf16.mxu0 %v694_v1  ;;  %v568_v3 = vld [vmem:[#allocation3] sm:$0xff]   ;;  %v569_v4 = vld [vmem:[#allocation3 + $0x8] sm:$0xff]   ;;  %v570_v5 = vld [vmem:[#allocation3 + $0x10] sm:$0xff]   ;;  %v696_v19 = vmov 1.0|1.0   ;;  %s697_s13 = smov [#allocation9]  }
  0x38   :  { %517 = vmatprep.subr.bf16.mxu1 %v694_v1  ;;  %74 = vperm.xlu0 %567, %v72_v2   ;;  %v576_v6 = vld [vmem:[#allocation6] sm:$0xff]   ;;  %v577_v7 = vld [vmem:[#allocation6 + $0x8] sm:$0xff]   ;;  %v571_v8 = vld [vmem:[#allocation3 + $0x18] sm:$0xff]   ;;  %v71_v17 = vand.u32 127, %v70_v16 }
  0x39   :  { %513 = vmatprep.mubr.msk.bf16.mxu0 %vm695_vm0, %v694_v1  ;;  %533 = vmatprep.mubr.msk.bf16.mxu1 %vm695_vm0, %v694_v1  ;;  %v572_v9 = vld [vmem:[#allocation3 + $0x20] sm:$0xff]   ;;  %v578_v10 = vld [vmem:[#allocation6 + $0x10] sm:$0xff]   ;;  %v579_v11 = vld [vmem:[#allocation6 + $0x18] sm:$0xff]  }
  0x3a   :  { %498 = vmatpush3.bf16.msra.mxu0 %v568_v3  ;;  %518 = vmatpush3.bf16.msra.mxu1 %v576_v6  ;;  %v573_v12 = vld [vmem:[#allocation3 + $0x28] sm:$0xff]   ;;  %v580_v13 = vld [vmem:[#allocation6 + $0x20] sm:$0xff]   ;;  %v574_v14 = vld [vmem:[#allocation3 + $0x30] sm:$0xff]  }
  0x3b   :  { %499 = vmatprep.subr.bf16.mxu0 %v694_v1  ;;  %519 = vmatprep.subr.bf16.mxu1 %v694_v1  ;;  %v575_v15 = vld [vmem:[#allocation3 + $0x38] sm:$0xff]   ;;  %v581_v20 = vld [vmem:[#allocation6 + $0x28] sm:$0xff]   ;;  %v582_v21 = vld [vmem:[#allocation6 + $0x30] sm:$0xff]  }
  0x3c   :  { %v583_v22 = vld [vmem:[#allocation6 + $0x38] sm:$0xff]   ;;  %v584_v23 = vld [vmem:[#allocation8] sm:$0xff]   ;;  %v585_v24 = vld [vmem:[#allocation8 + $0x8] sm:$0xff]  }
  0x3d   :  { %v586_v25 = vld [vmem:[#allocation8 + $0x10] sm:$0xff]   ;;  %v587_v32 = vld [vmem:[#allocation8 + $0x18] sm:$0xff]   ;;  %v588_v33 = vld [vmem:[#allocation8 + $0x20] sm:$0xff]  }
  0x3e   :  { %500 = vmatpush3.bf16.msra.mxu0 %v569_v4  ;;  %520 = vmatpush3.bf16.msra.mxu1 %v577_v7  ;;  %v589_v34 = vld [vmem:[#allocation8 + $0x28] sm:$0xff]   ;;  %v590_v35 = vld [vmem:[#allocation8 + $0x30] sm:$0xff]   ;;  %v591_v36 = vld [vmem:[#allocation8 + $0x38] sm:$0xff]  }
  0x3f   :  { %501 = vmatprep.subr.bf16.mxu0 %v694_v1  ;;  %521 = vmatprep.subr.bf16.mxu1 %v694_v1  ;;  %v452_v37 = vld [vmem:[%s839_s3] ss:$0 sm:$0xff]  ;;  %s431_s3 = sshll.u32 %s697_s13, 4  ;;  %s432_s3 = int_to_ptr.vmem [resolvable:$true] %s431_s3 }
  0x40   :  { %v469_v50 = vld [vmem:[%s841_s5] ss:$0 sm:$0xff]  ;;  %s660_s14 = scalar_lea.vmem %s432_s3, 128  ;;  %p665_p11 = scmp.lt.s32.totalorder %s432_s3, %s432_s3 }
  0x41   :  { %p661_p10 = scmp.ne.s32.totalorder %s432_s3, %s660_s14  ;;  %p666_p12 = scmp.lt.s32.totalorder %s660_s14, %s660_s14 }
  0x42   :  { %502 = vmatpush3.bf16.msra.mxu0 %v570_v5  ;;  %522 = vmatpush3.bf16.msra.mxu1 %v578_v10 }
  0x43   :  { %503 = vmatprep.subr.bf16.mxu0 %v694_v1  ;;  %523 = vmatprep.subr.bf16.mxu1 %v694_v1  ;;  %p667_p13 = por %p666_p12, %p665_p11 }
  0x45   :  { %p668_p0 = pnand %p667_p13, %p661_p10 }
  0x46   :  { %504 = vmatpush3.bf16.msra.mxu0 %v571_v8  ;;  %524 = vmatpush3.bf16.msra.mxu1 %v579_v11 }
  0x47   :  { %505 = vmatprep.subr.bf16.mxu0 %v694_v1  ;;  %525 = vmatprep.subr.bf16.mxu1 %v694_v1 }
  0x4a   :  { %506 = vmatpush3.bf16.msra.mxu0 %v572_v9  ;;  %526 = vmatpush3.bf16.msra.mxu1 %v580_v13 }
  0x4b   :  { %507 = vmatprep.subr.bf16.mxu0 %v694_v1  ;;  %527 = vmatprep.subr.bf16.mxu1 %v694_v1 }
  0x4e   :  { %508 = vmatpush3.bf16.msra.mxu0 %v573_v12  ;;  %528 = vmatpush3.bf16.msra.mxu1 %v581_v20 }
  0x4f   :  { %509 = vmatprep.subr.bf16.mxu0 %v694_v1  ;;  %529 = vmatprep.subr.bf16.mxu1 %v694_v1 }
  0x52   :  { %510 = vmatpush3.bf16.msra.mxu0 %v574_v14  ;;  %530 = vmatpush3.bf16.msra.mxu1 %v582_v21 }
  0x53   :  { %511 = vmatprep.subr.bf16.mxu0 %v694_v1  ;;  %531 = vmatprep.subr.bf16.mxu1 %v694_v1 }
  0x56   :  { %512 = vmatpush3.bf16.msra.mxu0 %v575_v15  ;;  %532 = vmatpush3.bf16.msra.mxu1 %v583_v22 }
  0x57   :  { %537 = vmatprep.subr.bf16.mxu0 %v694_v1 }
  0xb7   :  { %v75_v18 = vpop.permute.xlu0 %74 }
  0xb8   :  { %vm76_vm1 = vcmp.eq.s32.totalorder %v75_v18, %v71_v17 }
  0xb9   :  { %vm450_vm2 = vmpackc.low %vm76_vm1, %vm76_vm1 }
  0xba   :  { %514 = vmatmul.mubr.msk.bf16.vlgmr.msra.gmra.mrb[0].mxu0 %vm450_vm2, %v696_v19 }
  0xbb   :  { %553 = vmatprep.mubr.msk.bf16.mxu0 %vm695_vm0, %v694_v1  ;;  %538 = vmatpush3.bf16.msra.mxu0 %v584_v23 }
  0xbc   :  { %539 = vmatprep.subr.bf16.mxu0 %v694_v1 }
  0xbf   :  { %540 = vmatpush3.bf16.msra.mxu0 %v585_v24 }
  0xc0   :  { %541 = vmatprep.subr.bf16.mxu0 %v694_v1 }
  0xc3   :  { %542 = vmatpush3.bf16.msra.mxu0 %v586_v25 }
  0xc4   :  { %543 = vmatprep.subr.bf16.mxu0 %v694_v1 }
  0xc7   :  { %544 = vmatpush3.bf16.msra.mxu0 %v587_v32 }
  0xc8   :  { %545 = vmatprep.subr.bf16.mxu0 %v694_v1 }
  0xcb   :  { %546 = vmatpush3.bf16.msra.mxu0 %v588_v33 }
  0xcc   :  { %547 = vmatprep.subr.bf16.mxu0 %v694_v1 }
  0xcf   :  { %548 = vmatpush3.bf16.msra.mxu0 %v589_v34 }
  0xd0   :  { %549 = vmatprep.subr.bf16.mxu0 %v694_v1 }
  0xd3   :  { %550 = vmatpush3.bf16.msra.mxu0 %v590_v35 }
  0xd4   :  { %551 = vmatprep.subr.bf16.mxu0 %v694_v1 }
  0xd7   :  { %552 = vmatpush3.bf16.msra.mxu0 %v591_v36 }
 0x18d   :  { %v178_v26 = vpop.f32.mrb[0].mxu0 }
 0x18e   :  { %v184_v27 = vpack.c.bf16 %v178_v26, %v178_v26  ;;  %v515_v28 = vpop.f32.mrb[1].mxu0 }
 0x18f   :  { %v181_v29 = vpop.f32.mrb[2].mxu0 }
 0x190   :  { %185 = vst [vmem:[#allocation2] sm:$0xf] %v184_v27  ;;  %v516_v30 = vpop.f32.mrb[3].mxu0 }
 0x197   :  { %v187_v31 = vld [vmem:[#allocation2] sm:$0xf] }
 0x198   :  { %534 = vmatmul.mubr.bf16.vlgmr.msra.gmra.mrb[0].mxu1 %v187_v31 }
 0x26b   :  { %v293_v38 = vpop.f32.mrb[0].mxu1 }
 0x26c   :  { %v294_v39 = vadd.f32 %v452_v37, %v293_v38  ;;  %v535_v40 = vpop.f32.mrb[1].mxu1 }
 0x26d   :  { %v296_v41 = vpop.f32.mrb[2].mxu1 }
 0x26e   :  { %v300_v42 = vmul.f32 0.70710677, %v294_v39  ;;  %v536_v43 = vpop.f32.mrb[3].mxu1  ;;  %v299_v45 = vmul.f32 0.5, %v294_v39 }
 0x270   :  { %592 = verf.f32 %v300_v42 }
 0x27a   :  { %v593_v44 = vpop.eup %592 }
 0x27b   :  { %v302_v46 = vadd.f32 1.0, %v593_v44 }
 0x27d   :  { %v303_v47 = vmul.f32 %v302_v46, %v299_v45 }
 0x27f   :  { %v305_v48 = vpack.c.bf16 %v303_v47, %v303_v47 }
 0x281   :  { %554 = vmatmul.mubr.bf16.vlgmr.msra.gmra.mrb[4].mxu0 %v305_v48 }
 0x354   :  { %v404_v49 = vpop.f32.mrb[4].mxu0 }
 0x355   :  { %v555_v51 = vpop.f32.mrb[5].mxu0  ;;  %v423_v54 = vadd.f32 %v469_v50, %v404_v49 }
 0x356   :  { %v407_v52 = vpop.f32.mrb[6].mxu0 }
 0x357   :  { %v556_v53 = vpop.f32.mrb[7].mxu0  ;;  %424 = vst [vmem:[#allocation9] sm:$0xff] %v423_v54 }
 0x358   :  { %671 = shalt.err (!%p668_p0)
}
 0x359   :  { %s672_s17 = scalar_lea.hbm %s842_s6, 128 }
 0x35a   :  { %p673_p1 = scmp.ne.s32.totalorder %s842_s6, %s672_s17  ;;  %p676_p2 = scmp.lt.u32.totalorder %s672_s17, %s842_s6 }
 0x35c   :  { %p678_p3 = pnand %p676_p2, %p673_p1 }
 0x35e   :  { %681 = shalt.err (!%p678_p3)
}
 0x35f   :  { %434 = dma.vmem_to_hbm [thread:$0]  %s432_s3, 128, %s842_s6, [#allocation5]  }
 0x360   :  { %686 = dma.done.wait [#allocation5], 128  }
 0x361   :  { %687 = vsyncadd [#allocation5], 4294967168 }
 0x362   :  { %438 = vsyncpa [#allocation4], 1 }
 0x363   :  { %439 = vsyncpa [#allocation7], 1 }
 0x364   :  { %440 = vsyncpa [#allocation5], 1 }

// kernel: tpu_custom_call.1
= control target key start
LH: loop header
LB: loop body
LE: loop exit
PB: predicated region body
PF: predicated region fallthrough
CT: control target
= control target key end

     0   :  { %11 = vsyncpa [#allocation4], 0  ;;  %s836_s0 = inlined_call_operand.vmem [shape: s32[8,1], index: 0, kind: input, shape index: {}]   ;;  %s837_s1 = inlined_call_operand.hbm [shape: bf16[128,128], index: 1, kind: input, shape index: {}]   ;;  %s838_s2 = inlined_call_operand.hbm [shape: bf16[128,128], index: 2, kind: input, shape index: {}]   ;;  %s839_s3 = inlined_call_operand.vmem [shape: f32[1,128], index: 3, kind: input, shape index: {}]   ;;  %s840_s4 = inlined_call_operand.hbm [shape: bf16[128,128], index: 4, kind: input, shape index: {}]   ;;  %s841_s5 = inlined_call_operand.vmem [shape: f32[1,128], index: 5, kind: input, shape index: {}]   ;;  %s842_s6 = inlined_call_operand.hbm [shape: f32[8,128], index: 6, kind: output, shape index: {}]  }
   0x1   :  { %12 = vsyncpa [#allocation7], 0 }
   0x2   :  { %13 = vsyncpa [#allocation5], 0  ;;  %s688_s21 = smov [#allocation6]   ;;  %s689_s23 = smov [#allocation3]  }
   0x3   :  { %s33_s22 = sshll.u32 %s688_s21, 4  ;;  %s21_s24 = sshll.u32 %s689_s23, 4  ;;  %s34_s22 = int_to_ptr.vmem [resolvable:$true] %s33_s22  ;;  %s733_s24 = int_to_ptr.vmem [resolvable:$true] %s21_s24 }
   0x4   :  { %s594_s27 = scalar_lea.hbm %s838_s2, 1024 }
   0x5   :  { %p595_p0 = scmp.ne.s32.totalorder %s838_s2, %s594_s27  ;;  %p598_p1 = scmp.lt.u32.totalorder %s594_s27, %s838_s2 }
   0x7   :  { %p600_p2 = pnand %p598_p1, %p595_p0 }
   0x9   :  { %603 = shalt.err (!%p600_p2)
}
   0xa   :  { %s604_s8 = scalar_lea.vmem %s34_s22, 1024  ;;  %p609_p4 = scmp.lt.s32.totalorder %s34_s22, %s34_s22 }
   0xb   :  { %p605_p3 = scmp.ne.s32.totalorder %s34_s22, %s604_s8  ;;  %p610_p5 = scmp.lt.s32.totalorder %s604_s8, %s604_s8 }
   0xd   :  { %p611_p6 = por %p610_p5, %p609_p4 }
   0xf   :  { %p612_p7 = pnand %p611_p6, %p605_p3 }
  0x11   :  { %615 = shalt.err (!%p612_p7)
}
  0x12   :  { %s690_s9 = smov 64   ;;  %s691_s10 = smov 4  }
  0x13   :  { %39 = dma.hbm_to_vmem [thread:$0]  %s838_s2, 1024, %s34_s22, [#allocation7], %s690_s9, %s690_s9, %s691_s10  }
  0x14   :  { %s616_s15 = scalar_lea.hbm %s837_s1, 1024 }
  0x15   :  { %p617_p8 = scmp.ne.s32.totalorder %s837_s1, %s616_s15  ;;  %p620_p9 = scmp.lt.u32.totalorder %s616_s15, %s837_s1 }
  0x17   :  { %p622_p10 = pnand %p620_p9, %p617_p8 }
  0x19   :  { %625 = shalt.err (!%p622_p10)
}
  0x1a   :  { %s626_s20 = scalar_lea.vmem %s733_s24, 1024  ;;  %p631_p12 = scmp.lt.s32.totalorder %s733_s24, %s733_s24 }
  0x1b   :  { %p627_p11 = scmp.ne.s32.totalorder %s733_s24, %s626_s20  ;;  %p632_p13 = scmp.lt.s32.totalorder %s626_s20, %s626_s20 }
  0x1d   :  { %p633_p0 = por %p632_p13, %p631_p12 }
  0x1f   :  { %p634_p1 = pnand %p633_p0, %p627_p11 }
  0x21   :  { %637 = shalt.err (!%p634_p1)
}
  0x22   :  { %27 = dma.hbm_to_vmem [thread:$0]  %s837_s1, 1024, %s733_s24, [#allocation4], %s690_s9, %s690_s9, %s691_s10  }
  0x23   :  { %s692_s22 = smov [#allocation8]   ;;  %s638_s27 = scalar_lea.hbm %s840_s4, 1024 }
  0x24   :  { %s47_s23 = sshll.u32 %s692_s22, 4  ;;  %p639_p2 = scmp.ne.s32.totalorder %s840_s4, %s638_s27  ;;  %s48_s23 = int_to_ptr.vmem [resolvable:$true] %s47_s23 }
  0x25   :  { %p642_p3 = scmp.lt.u32.totalorder %s638_s27, %s840_s4 }
  0x27   :  { %p644_p4 = pnand %p642_p3, %p639_p2 }
  0x29   :  { %647 = shalt.err (!%p644_p4)
}
  0x2a   :  { %s648_s8 = scalar_lea.vmem %s48_s23, 1024  ;;  %p653_p6 = scmp.lt.s32.totalorder %s48_s23, %s48_s23 }
  0x2b   :  { %p649_p5 = scmp.ne.s32.totalorder %s48_s23, %s648_s8  ;;  %p654_p7 = scmp.lt.s32.totalorder %s648_s8, %s648_s8 }
  0x2d   :  { %p655_p8 = por %p654_p7, %p653_p6 }
  0x2f   :  { %p656_p9 = pnand %p655_p8, %p649_p5 }
  0x31   :  { %659 = shalt.err (!%p656_p9)
}
  0x32   :  { %53 = dma.hbm_to_vmem [thread:$0]  %s840_s4, 1024, %s48_s23, [#allocation7], %s690_s9, %s690_s9, %s691_s10  }
  0x33   :  { %682 = dma.done.wait [#allocation4], 1024  }
  0x34   :  { %683 = vsyncadd [#allocation4], 4294966272 }
  0x35   :  { %684 = dma.done.wait [#allocation7], 2048  }
  0x36   :  { %685 = vsyncadd [#allocation7], 4294965248  ;;  %v693_v0 = vmov 0   ;;  %v694_v1 = vmov 0.0   ;;  %v72_v2 = vld [vmem:[%s836_s0] sm:$0xff]  ;;  %vm695_vm0 = vmmov 0   ;;  %v70_v16 = vlaneseq }
  0x37   :  { %567 = vset.pattern.permute.xlu0 %v693_v0  ;;  %497 = vmatprep.subr.bf16.mxu0 %v694_v1  ;;  %v568_v3 = vld [vmem:[#allocation3] sm:$0xff]   ;;  %v569_v4 = vld [vmem:[#allocation3 + $0x8] sm:$0xff]   ;;  %v570_v5 = vld [vmem:[#allocation3 + $0x10] sm:$0xff]   ;;  %v696_v19 = vmov 1.0|1.0   ;;  %s697_s13 = smov [#allocation9]  }
  0x38   :  { %517 = vmatprep.subr.bf16.mxu1 %v694_v1  ;;  %74 = vperm.xlu0 %567, %v72_v2   ;;  %v576_v6 = vld [vmem:[#allocation6] sm:$0xff]   ;;  %v577_v7 = vld [vmem:[#allocation6 + $0x8] sm:$0xff]   ;;  %v571_v8 = vld [vmem:[#allocation3 + $0x18] sm:$0xff]   ;;  %v71_v17 = vand.u32 127, %v70_v16 }
  0x39   :  { %513 = vmatprep.mubr.msk.bf16.mxu0 %vm695_vm0, %v694_v1  ;;  %533 = vmatprep.mubr.msk.bf16.mxu1 %vm695_vm0, %v694_v1  ;;  %v572_v9 = vld [vmem:[#allocation3 + $0x20] sm:$0xff]   ;;  %v578_v10 = vld [vmem:[#allocation6 + $0x10] sm:$0xff]   ;;  %v579_v11 = vld [vmem:[#allocation6 + $0x18] sm:$0xff]  }
  0x3a   :  { %498 = vmatpush3.bf16.msra.mxu0 %v568_v3  ;;  %518 = vmatpush3.bf16.msra.mxu1 %v576_v6  ;;  %v573_v12 = vld [vmem:[#allocation3 + $0x28] sm:$0xff]   ;;  %v580_v13 = vld [vmem:[#allocation6 + $0x20] sm:$0xff]   ;;  %v574_v14 = vld [vmem:[#allocation3 + $0x30] sm:$0xff]  }
  0x3b   :  { %499 = vmatprep.subr.bf16.mxu0 %v694_v1  ;;  %519 = vmatprep.subr.bf16.mxu1 %v694_v1  ;;  %v575_v15 = vld [vmem:[#allocation3 + $0x38] sm:$0xff]   ;;  %v581_v20 = vld [vmem:[#allocation6 + $0x28] sm:$0xff]   ;;  %v582_v21 = vld [vmem:[#allocation6 + $0x30] sm:$0xff]  }
  0x3c   :  { %v583_v22 = vld [vmem:[#allocation6 + $0x38] sm:$0xff]   ;;  %v584_v23 = vld [vmem:[#allocation8] sm:$0xff]   ;;  %v585_v24 = vld [vmem:[#allocation8 + $0x8] sm:$0xff]  }
  0x3d   :  { %v586_v25 = vld [vmem:[#allocation8 + $0x10] sm:$0xff]   ;;  %v587_v32 = vld [vmem:[#allocation8 + $0x18] sm:$0xff]   ;;  %v588_v33 = vld [vmem:[#allocation8 + $0x20] sm:$0xff]  }
  0x3e   :  { %500 = vmatpush3.bf16.msra.mxu0 %v569_v4  ;;  %520 = vmatpush3.bf16.msra.mxu1 %v577_v7  ;;  %v589_v34 = vld [vmem:[#allocation8 + $0x28] sm:$0xff]   ;;  %v590_v35 = vld [vmem:[#allocation8 + $0x30] sm:$0xff]   ;;  %v591_v36 = vld [vmem:[#allocation8 + $0x38] sm:$0xff]  }
  0x3f   :  { %501 = vmatprep.subr.bf16.mxu0 %v694_v1  ;;  %521 = vmatprep.subr.bf16.mxu1 %v694_v1  ;;  %v452_v37 = vld [vmem:[%s839_s3] ss:$0 sm:$0xff]  ;;  %s431_s3 = sshll.u32 %s697_s13, 4  ;;  %s432_s3 = int_to_ptr.vmem [resolvable:$true] %s431_s3 }
  0x40   :  { %v469_v50 = vld [vmem:[%s841_s5] ss:$0 sm:$0xff]  ;;  %s660_s14 = scalar_lea.vmem %s432_s3, 128  ;;  %p665_p11 = scmp.lt.s32.totalorder %s432_s3, %s432_s3 }
  0x41   :  { %p661_p10 = scmp.ne.s32.totalorder %s432_s3, %s660_s14  ;;  %p666_p12 = scmp.lt.s32.totalorder %s660_s14, %s660_s14 }
  0x42   :  { %502 = vmatpush3.bf16.msra.mxu0 %v570_v5  ;;  %522 = vmatpush3.bf16.msra.mxu1 %v578_v10 }
  0x43   :  { %503 = vmatprep.subr.bf16.mxu0 %v694_v1  ;;  %523 = vmatprep.subr.bf16.mxu1 %v694_v1  ;;  %p667_p13 = por %p666_p12, %p665_p11 }
  0x45   :  { %p668_p0 = pnand %p667_p13, %p661_p10 }
  0x46   :  { %504 = vmatpush3.bf16.msra.mxu0 %v571_v8  ;;  %524 = vmatpush3.bf16.msra.mxu1 %v579_v11 }
  0x47   :  { %505 = vmatprep.subr.bf16.mxu0 %v694_v1  ;;  %525 = vmatprep.subr.bf16.mxu1 %v694_v1 }
  0x4a   :  { %506 = vmatpush3.bf16.msra.mxu0 %v572_v9  ;;  %526 = vmatpush3.bf16.msra.mxu1 %v580_v13 }
  0x4b   :  { %507 = vmatprep.subr.bf16.mxu0 %v694_v1  ;;  %527 = vmatprep.subr.bf16.mxu1 %v694_v1 }
  0x4e   :  { %508 = vmatpush3.bf16.msra.mxu0 %v573_v12  ;;  %528 = vmatpush3.bf16.msra.mxu1 %v581_v20 }
  0x4f   :  { %509 = vmatprep.subr.bf16.mxu0 %v694_v1  ;;  %529 = vmatprep.subr.bf16.mxu1 %v694_v1 }
  0x52   :  { %510 = vmatpush3.bf16.msra.mxu0 %v574_v14  ;;  %530 = vmatpush3.bf16.msra.mxu1 %v582_v21 }
  0x53   :  { %511 = vmatprep.subr.bf16.mxu0 %v694_v1  ;;  %531 = vmatprep.subr.bf16.mxu1 %v694_v1 }
  0x56   :  { %512 = vmatpush3.bf16.msra.mxu0 %v575_v15  ;;  %532 = vmatpush3.bf16.msra.mxu1 %v583_v22 }
  0x57   :  { %537 = vmatprep.subr.bf16.mxu0 %v694_v1 }
  0xb7   :  { %v75_v18 = vpop.permute.xlu0 %74 }
  0xb8   :  { %vm76_vm1 = vcmp.eq.s32.totalorder %v75_v18, %v71_v17 }
  0xb9   :  { %vm450_vm2 = vmpackc.low %vm76_vm1, %vm76_vm1 }
  0xba   :  { %514 = vmatmul.mubr.msk.bf16.vlgmr.msra.gmra.mrb[0].mxu0 %vm450_vm2, %v696_v19 }
  0xbb   :  { %553 = vmatprep.mubr.msk.bf16.mxu0 %vm695_vm0, %v694_v1  ;;  %538 = vmatpush3.bf16.msra.mxu0 %v584_v23 }
  0xbc   :  { %539 = vmatprep.subr.bf16.mxu0 %v694_v1 }
  0xbf   :  { %540 = vmatpush3.bf16.msra.mxu0 %v585_v24 }
  0xc0   :  { %541 = vmatprep.subr.bf16.mxu0 %v694_v1 }
  0xc3   :  { %542 = vmatpush3.bf16.msra.mxu0 %v586_v25 }
  0xc4   :  { %543 = vmatprep.subr.bf16.mxu0 %v694_v1 }
  0xc7   :  { %544 = vmatpush3.bf16.msra.mxu0 %v587_v32 }
  0xc8   :  { %545 = vmatprep.subr.bf16.mxu0 %v694_v1 }
  0xcb   :  { %546 = vmatpush3.bf16.msra.mxu0 %v588_v33 }
  0xcc   :  { %547 = vmatprep.subr.bf16.mxu0 %v694_v1 }
  0xcf   :  { %548 = vmatpush3.bf16.msra.mxu0 %v589_v34 }
  0xd0   :  { %549 = vmatprep.subr.bf16.mxu0 %v694_v1 }
  0xd3   :  { %550 = vmatpush3.bf16.msra.mxu0 %v590_v35 }
  0xd4   :  { %551 = vmatprep.subr.bf16.mxu0 %v694_v1 }
  0xd7   :  { %552 = vmatpush3.bf16.msra.mxu0 %v591_v36 }
 0x18d   :  { %v178_v26 = vpop.f32.mrb[0].mxu0 }
 0x18e   :  { %v184_v27 = vpack.c.bf16 %v178_v26, %v178_v26  ;;  %v515_v28 = vpop.f32.mrb[1].mxu0 }
 0x18f   :  { %v181_v29 = vpop.f32.mrb[2].mxu0 }
 0x190   :  { %185 = vst [vmem:[#allocation2] sm:$0xf] %v184_v27  ;;  %v516_v30 = vpop.f32.mrb[3].mxu0 }
 0x197   :  { %v187_v31 = vld [vmem:[#allocation2] sm:$0xf] }
 0x198   :  { %534 = vmatmul.mubr.bf16.vlgmr.msra.gmra.mrb[0].mxu1 %v187_v31 }
 0x26b   :  { %v293_v38 = vpop.f32.mrb[0].mxu1 }
 0x26c   :  { %v294_v39 = vadd.f32 %v452_v37, %v293_v38  ;;  %v535_v40 = vpop.f32.mrb[1].mxu1 }
 0x26d   :  { %v296_v41 = vpop.f32.mrb[2].mxu1 }
 0x26e   :  { %v300_v42 = vmul.f32 0.70710677, %v294_v39  ;;  %v536_v43 = vpop.f32.mrb[3].mxu1  ;;  %v299_v45 = vmul.f32 0.5, %v294_v39 }
 0x270   :  { %592 = verf.f32 %v300_v42 }
 0x27a   :  { %v593_v44 = vpop.eup %592 }
 0x27b   :  { %v302_v46 = vadd.f32 1.0, %v593_v44 }
 0x27d   :  { %v303_v47 = vmul.f32 %v302_v46, %v299_v45 }
 0x27f   :  { %v305_v48 = vpack.c.bf16 %v303_v47, %v303_v47 }
 0x281   :  { %554 = vmatmul.mubr.bf16.vlgmr.msra.gmra.mrb[4].mxu0 %v305_v48 }
 0x354   :  { %v404_v49 = vpop.f32.mrb[4].mxu0 }
 0x355   :  { %v555_v51 = vpop.f32.mrb[5].mxu0  ;;  %v423_v54 = vadd.f32 %v469_v50, %v404_v49 }
 0x356   :  { %v407_v52 = vpop.f32.mrb[6].mxu0 }
 0x357   :  { %v556_v53 = vpop.f32.mrb[7].mxu0  ;;  %424 = vst [vmem:[#allocation9] sm:$0xff] %v423_v54 }
 0x358   :  { %671 = shalt.err (!%p668_p0)
}
 0x359   :  { %s672_s17 = scalar_lea.hbm %s842_s6, 128 }
 0x35a   :  { %p673_p1 = scmp.ne.s32.totalorder %s842_s6, %s672_s17  ;;  %p676_p2 = scmp.lt.u32.totalorder %s672_s17, %s842_s6 }
 0x35c   :  { %p678_p3 = pnand %p676_p2, %p673_p1 }
 0x35e   :  { %681 = shalt.err (!%p678_p3)
}
 0x35f   :  { %434 = dma.vmem_to_hbm [thread:$0]  %s432_s3, 128, %s842_s6, [#allocation5]  }
 0x360   :  { %686 = dma.done.wait [#allocation5], 128  }
 0x361   :  { %687 = vsyncadd [#allocation5], 4294967168 }
 0x362   :  { %438 = vsyncpa [#allocation4], 1 }
 0x363   :  { %439 = vsyncpa [#allocation7], 1 }
 0x364   :  { %440 = vsyncpa [#allocation5], 1 }

</bundles_post_ra>
